<compile_context>
chip_gen: v7x
topology: tpu7x:2x2x1
jax: 0.10.0
libtpu: 0.0.40
codegen_flags: <defaults>
</compile_context>

<pallas_src>
import jax
import jax.numpy as jnp
from jax.experimental import pallas as pl
from jax.experimental.pallas import tpu as pltpu

_LANE = 128  # vreg lane width


def _identity_flow_kernel(z_ref, x_ref):
    """Pure lane-dense copy: x = f(z) = z for the identity flow."""
    x_ref[...] = z_ref[...]


def _round_up(n, m):
    return ((n + m - 1) // m) * m


def _round_down(n, m):
    return (n // m) * m


def _sublane(dtype):
    """Rows of this dtype packed into one 8x128x32b vreg (f32:8 bf16:16 i8:32)."""
    itemsize = jnp.dtype(dtype).itemsize
    return max(8, 32 // itemsize)


def _choose_cols(n_elems, sublane):
    """Largest lane-dense column count (multiple of 128) dividing n_elems.

    Prefers a column count whose row count is sublane-aligned.  Returns None
    when no multiple of 128 divides n_elems (pad fallback).
    """
    candidates = [c for c in (2048, 1024, 512, 256, _LANE) if n_elems % c == 0]
    if not candidates:
        return None
    for c in candidates:
        if (n_elems // c) % sublane == 0:
            return c
    return candidates[0]


def _choose_block_rows(rows, cols, itemsize, sublane):
    """Row-tile size: <= 2 MiB per block, >= 4 grid steps when rows permit."""
    # ~2 MiB blocks: double-buffered in + out <= 8 MiB of VMEM, safe on v5e's
    # 16 MiB default scoped VMEM and trivially on v6e / v7x.
    target = max(sublane, _round_down((2 << 20) // (cols * itemsize), sublane))
    # Keep the grid at >= 4 iterations when possible so v7x's two TensorCores
    # both get work under dimension_semantics=("parallel",).
    cap = max(sublane, _round_down(rows // 4, sublane))
    block_rows = min(target, cap)
    if block_rows >= rows:
        # Single full-extent block (allowed even when rows % sublane != 0).
        return rows
    return block_rows


@jax.jit
def flow_forward(z):
    """x, log_det = Flow.forward(z) (identity-flow instantiation). z is NCHW."""
    B = z.shape[0]
    n_elems = z.size
    dtype = z.dtype
    itemsize = jnp.dtype(dtype).itemsize
    sublane = _sublane(dtype)

    cols = _choose_cols(n_elems, sublane)
    if cols is not None:
        # Free contiguous reshape of NCHW into a lane-dense slab; no padding,
        # no tail slice, no extra HBM traffic.
        rows = n_elems // cols
        z2d = z.reshape(rows, cols)
        padded = False
    else:
        # TODO(synk): pad fallback costs two extra HBM passes (pad + tail
        #             slice); only taken when no multiple of 128 divides z.size.
        cols = _LANE
        rows = _round_up(pl.cdiv(n_elems, cols), sublane)
        total = rows * cols
        z2d = jnp.pad(z.reshape(-1), (0, total - n_elems)).reshape(rows, cols)
        padded = True

    block_rows = _choose_block_rows(rows, cols, itemsize, sublane)
    grid = (pl.cdiv(rows, block_rows),)

    x2d = pl.pallas_call(
        _identity_flow_kernel,
        out_shape=jax.ShapeDtypeStruct((rows, cols), dtype),
        grid=grid,
        in_specs=[pl.BlockSpec((block_rows, cols), lambda i: (i, 0))],
        out_specs=pl.BlockSpec((block_rows, cols), lambda i: (i, 0)),
        compiler_params=pltpu.CompilerParams(
            dimension_semantics=("parallel",),
            vmem_limit_bytes=32 << 20,
        ),
        cost_estimate=pl.CostEstimate(
            flops=0,
            transcendentals=0,
            bytes_accessed=2 * rows * cols * itemsize,
        ),
    )(z2d)

    if padded:
        x = x2d.reshape(-1)[:n_elems].reshape(z.shape)
    else:
        x = x2d.reshape(z.shape)

    # log|det df/dz| == 0 exactly for the identity flow (sum of log(1) over
    # feature dims); kept outside the kernel so the kernel output stays
    # lane-dense (no lane-width-1 masked stores).
    log_det = jnp.zeros((B,), dtype=jnp.float32)
    return x, log_det


if __name__ == "__main__":
    key = jax.random.PRNGKey(0)
    # Small NCHW input consistent with a flow over image-like data.
    z = jax.random.normal(key, (2, 4, 16, 16), dtype=jnp.float32)

    x, log_det = flow_forward(z)
    jax.block_until_ready((x, log_det))

    # Sanity checks of the base-class contract (identity-flow instantiation).
    assert x.shape == z.shape
    assert log_det.shape == (z.shape[0],)
    assert bool(jnp.allclose(x, z))
    assert bool(jnp.allclose(log_det, jnp.zeros(z.shape[0], jnp.float32)))

    print("KERNEL_OK")
</pallas_src>

<mosaic_0001>
module attributes {stable_mosaic.version = 11 : i64} {
  func.func @_identity_flow_kernel(%arg0: i32, %arg1: memref<8x256xf32, #tpu.memory_space<vmem>>, %arg2: memref<8x256xf32, #tpu.memory_space<vmem>>) attributes {dimension_semantics = [#tpu.dimension_semantics<parallel>], iteration_bounds = array<i64: 1>, scalar_prefetch = 0 : i64, scratch_operands = 0 : i64, tpu.core_type = #tpu.core_type<tc>, window_params = [{transform_indices = @transform_0, window_bounds = array<i64: 8, 256>}, {transform_indices = @transform_1, window_bounds = array<i64: 8, 256>}]} {
    %c0 = arith.constant 0 : index
    %c0_0 = arith.constant 0 : index
    %0 = vector.load %arg1[%c0, %c0_0] : memref<8x256xf32, #tpu.memory_space<vmem>>, vector<8x256xf32>
    %c0_1 = arith.constant 0 : index
    %c0_2 = arith.constant 0 : index
    %1 = vector.load %arg2[%c0_1, %c0_2] : memref<8x256xf32, #tpu.memory_space<vmem>>, vector<8x256xf32>
    tpu.vector_store %arg2[%c0_1, %c0_2], %0 {strides = array<i32>} : memref<8x256xf32, #tpu.memory_space<vmem>>, vector<8x256xf32>,
    return
  }
  func.func @transform_0(%arg0: i32) -> (i32, i32) {
    %c0_i32 = arith.constant 0 : i32
    %c0_i32_0 = arith.constant 0 : i32
    return %arg0, %c0_i32 : i32, i32
  }
  func.func @transform_1(%arg0: i32) -> (i32, i32) {
    %c0_i32 = arith.constant 0 : i32
    %c0_i32_0 = arith.constant 0 : i32
    return %arg0, %c0_i32 : i32, i32
  }
}

</mosaic_0001>

<bundles_post_ra>
// kernel: flow_forward.1
= control target key start
LH: loop header
LB: loop body
LE: loop exit
PB: predicated region body
PF: predicated region fallthrough
CT: control target
= control target key end

     0   :  { %s38_s0 = inlined_call_operand.vmem [shape: f32[8,256], index: 0, kind: input, shape index: {}]   ;;  %s39_s1 = inlined_call_operand.vmem [shape: f32[8,256], index: 1, kind: output, shape index: {}]  }
   0x1   :  { %v8_v0 = vld [vmem:[%s38_s0] sm:$0xff]  ;;  %v9_v1 = vld [vmem:[%s38_s0 + $0x8] sm:$0xff] }
   0x2   :  { %10 = vst [vmem:[%s39_s1] sm:$0xff] %v8_v0  ;;  %11 = vst [vmem:[%s39_s1 + $0x8] sm:$0xff] %v9_v1 }

</bundles_post_ra>
